<compile_context>
chip_gen: v7x
topology: tpu7x:2x2x1
jax: 0.10.0
libtpu: 0.0.40
codegen_flags: <defaults>
</compile_context>

<pallas_src>
import jax
import jax.numpy as jnp
import numpy as np
from jax import lax
from jax.experimental import pallas as pl
from jax.experimental.pallas import tpu as pltpu


# --------------------------- Pallas kernels ---------------------------------

def _conv_stats_kernel(x_ref, w_ref, b_ref, out_ref, stats_ref):
    """One (batch, spatial-tile) step of the upsample-folded conv.

    x_ref:     (1, 27*Cin, T)   bf16  im2col'd low-res tile (spatial on lanes)
    w_ref:     (8*Cout, 27*Cin) bf16  folded (parity x Cout, shift x Cin) weights
    b_ref:     (8*Cout, 1)      f32   bias replicated across the 8 parities
    out_ref:   (1, 8*Cout, T)   f32   conv + bias output
    stats_ref: (1, 8*Cout, 2)   f32   per-batch [sum, sumsq], accumulated over tiles
    """
    s = pl.program_id(1)

    acc = jnp.dot(w_ref[...], x_ref[0], preferred_element_type=jnp.float32)
    acc = acc + b_ref[...]                       # (8*Cout, 1) broadcast over lanes
    out_ref[0] = acc

    part = jnp.concatenate(
        [jnp.sum(acc, axis=1, keepdims=True),
         jnp.sum(acc * acc, axis=1, keepdims=True)],
        axis=1)                                  # (8*Cout, 2)

    @pl.when(s == 0)
    def _():
        stats_ref[...] = jnp.zeros_like(stats_ref)

    stats_ref[...] += part[None]


def _bn_relu_kernel(y_ref, scale_ref, shift_ref, out_ref):
    """Fused BatchNorm affine-apply + ReLU (lane-dense, spatial on lanes)."""
    out_ref[0] = jnp.maximum(y_ref[0] * scale_ref[...] + shift_ref[...], 0.0)


# --------------------------- pallas_call wrappers ----------------------------

def _pick_spatial_tile(P):
    """Largest lane-dense tile dividing P; prefer >=2 tiles so the pipeline overlaps."""
    for t in (2048, 1024, 512, 256, 128):
        if P % t == 0 and P // t >= 2:
            return t
    for t in (2048, 1024, 512, 256, 128):
        if P % t == 0:
            return t
    return P


def conv3d_folded_with_stats(x27, wb, b_m8):
    """x27: (N, 27*Cin, P) bf16; wb: (8*Cout, 27*Cin) bf16; b_m8: (8*Cout, 1) f32."""
    N, K27, P = x27.shape
    M8 = wb.shape[0]
    T = _pick_spatial_tile(P)
    conv, stats = pl.pallas_call(
        _conv_stats_kernel,
        out_shape=(jax.ShapeDtypeStruct((N, M8, P), jnp.float32),
                   jax.ShapeDtypeStruct((N, M8, 2), jnp.float32)),
        grid=(N, P // T),
        in_specs=[
            pl.BlockSpec((1, K27, T), lambda n, s: (n, 0, s)),
            pl.BlockSpec((M8, K27), lambda n, s: (0, 0)),
            pl.BlockSpec((M8, 1), lambda n, s: (0, 0)),
        ],
        out_specs=(
            pl.BlockSpec((1, M8, T), lambda n, s: (n, 0, s)),
            pl.BlockSpec((1, M8, 2), lambda n, s: (n, 0, 0)),   # per-batch accumulator
        ),
        compiler_params=pltpu.CompilerParams(
            dimension_semantics=("parallel", "arbitrary"),
            vmem_limit_bytes=32 * 1024 * 1024),
    )(x27, wb, b_m8)
    return conv, stats


def bn_relu(conv, scale_m8, shift_m8):
    """conv: (N, 8*Cout, P) f32; scale/shift: (8*Cout, 1) f32."""
    N, M8, P = conv.shape
    T = _pick_spatial_tile(P)
    return pl.pallas_call(
        _bn_relu_kernel,
        out_shape=jax.ShapeDtypeStruct((N, M8, P), jnp.float32),
        grid=(N, P // T),
        in_specs=[
            pl.BlockSpec((1, M8, T), lambda n, s: (n, 0, s)),
            pl.BlockSpec((M8, 1), lambda n, s: (0, 0)),
            pl.BlockSpec((M8, 1), lambda n, s: (0, 0)),
        ],
        out_specs=pl.BlockSpec((1, M8, T), lambda n, s: (n, 0, s)),
        compiler_params=pltpu.CompilerParams(
            dimension_semantics=("parallel", "parallel")),
    )(conv, scale_m8, shift_m8)


# --------------------------- wrapper-side layout (XLA) ------------------------

def _fold_upsample_into_weights(w_oidhw):
    """Fold nearest x2 upsample into the conv weights.

    Returns WB (8*Cout, 27*Cin).  Row p*Cout+o, p = parity (a,b,c); column
    t*Cin+i, t = shift (sd,sh,sw) in {0,1,2}^3, such that
      y[n,o,2z+a,2y+b,2x+c] = sum_t sum_i WB[row, col] * x_pad[n,i,z+sd,y+sh,x+sw]
    where x_pad is the low-res input zero-padded by 1 per spatial side.
    """
    Cout = w_oidhw.shape[0]
    Cin = w_oidhw.shape[1]
    a = jnp.arange(2)[:, None, None]          # parity
    s = jnp.arange(3)[None, :, None]          # low-res shift
    k = jnp.arange(3)[None, None, :]          # original 3-tap index
    # shift(a, k) = floor((a + k + 1) / 2)
    A = ((a + k + 1) // 2 == s).astype(jnp.float32)        # (2, 3, 3)
    wf = jnp.einsum('adk,bel,cfm,oiklm->abcodefi', A, A, A, w_oidhw)
    return wf.reshape(8 * Cout, 27 * Cin)


def _im2col_lowres(x_ncdhw):
    """(N,Cin,D,H,W) -> (N, 27*Cin, D*H*W): 27 shifted copies of the padded volume."""
    N, Cin, D, H, W = x_ncdhw.shape
    xp = jnp.pad(x_ncdhw, ((0, 0), (0, 0), (1, 1), (1, 1), (1, 1)))
    shifts = []
    for sd in range(3):
        for sh in range(3):
            for sw in range(3):
                shifts.append(xp[:, :, sd:sd + D, sh:sh + H, sw:sw + W])
    x27 = jnp.stack(shifts, axis=1)                         # (N, 27, Cin, D, H, W)
    return x27.reshape(N, 27 * Cin, D * H * W)


# --------------------------- module forward ---------------------------------

def up_conv_forward(x_ncdhw, w_oidhw, bias, gamma, beta, eps=1e-5):
    """Replicates up_conv.forward.  x_ncdhw: (N, Cin, D, H, W) float32."""
    N, Cin, D, H, W = x_ncdhw.shape
    Cout = w_oidhw.shape[0]
    M8 = 8 * Cout
    P = D * H * W

    # TODO(synk): at production sizes, build the 27-shift im2col per spatial tile
    # inside the kernel with manual DMA instead of materializing 27x the low-res
    # volume in HBM.
    x27 = _im2col_lowres(x_ncdhw).astype(jnp.bfloat16)
    wb = _fold_upsample_into_weights(w_oidhw).astype(jnp.bfloat16)
    b_m8 = jnp.tile(bias, 8).reshape(M8, 1).astype(jnp.float32)

    conv, stats = conv3d_folded_with_stats(x27, wb, b_m8)

    # BatchNorm3d (default training mode): biased batch statistics over (N, 2D, 2H, 2W).
    # TODO(synk): E[x^2]-E[x]^2 in f32 is fine here; use a centered/compensated
    # reduction at very large element counts.
    count = N * 8 * P                                        # == N * (2D)*(2H)*(2W)
    sums = stats[..., 0].reshape(N, 8, Cout).sum(axis=(0, 1))
    sqs = stats[..., 1].reshape(N, 8, Cout).sum(axis=(0, 1))
    mean = sums / count
    var = jnp.maximum(sqs / count - mean * mean, 0.0)
    inv = gamma / jnp.sqrt(var + eps)
    scale_m8 = jnp.tile(inv, 8).reshape(M8, 1)
    shift_m8 = jnp.tile(beta - mean * inv, 8).reshape(M8, 1)

    y = bn_relu(conv, scale_m8, shift_m8)                    # (N, 8*Cout, P)

    # de-interleave parities: (N, a, b, c, Cout, D, H, W) -> (N, Cout, 2D, 2H, 2W)
    y = y.reshape(N, 2, 2, 2, Cout, D, H, W)
    y = jnp.transpose(y, (0, 4, 5, 1, 6, 2, 7, 3))
    return y.reshape(N, Cout, 2 * D, 2 * H, 2 * W)


# --------------------------- pure-JAX reference ------------------------------

def up_conv_reference(x, w, b, gamma, beta, eps=1e-5):
    x_up = jnp.repeat(jnp.repeat(jnp.repeat(x, 2, axis=2), 2, axis=3), 2, axis=4)
    y = lax.conv_general_dilated(
        x_up, w, window_strides=(1, 1, 1), padding=[(1, 1)] * 3,
        dimension_numbers=("NCDHW", "OIDHW", "NCDHW"),
        precision=lax.Precision.HIGHEST,
    ) + b[None, :, None, None, None]
    mean = y.mean(axis=(0, 2, 3, 4), keepdims=True)
    var = y.var(axis=(0, 2, 3, 4), keepdims=True)            # biased (training-mode BN)
    yn = (y - mean) / jnp.sqrt(var + eps)
    yn = yn * gamma[None, :, None, None, None] + beta[None, :, None, None, None]
    return jnp.maximum(yn, 0.0)


# --------------------------- main --------------------------------------------

if __name__ == "__main__":
    key = jax.random.PRNGKey(0)
    k_x, k_w, k_b = jax.random.split(key, 3)

    N, in_ch, out_ch = 2, 8, 4
    D = H = W = 8                                            # upsampled to 16x16x16

    x = jax.random.normal(k_x, (N, in_ch, D, H, W), dtype=jnp.float32)
    w = jax.random.normal(k_w, (out_ch, in_ch, 3, 3, 3), dtype=jnp.float32) * 0.1
    b = jax.random.normal(k_b, (out_ch,), dtype=jnp.float32) * 0.1
    gamma = jnp.ones((out_ch,), jnp.float32)                 # BatchNorm3d affine init
    beta = jnp.zeros((out_ch,), jnp.float32)

    out = jax.block_until_ready(up_conv_forward(x, w, b, gamma, beta))
    ref = jax.block_until_ready(up_conv_reference(x, w, b, gamma, beta))

    assert out.shape == (N, out_ch, 2 * D, 2 * H, 2 * W), out.shape
    # bf16 MXU operands with f32 accumulation vs. f32 HIGHEST reference.
    np.testing.assert_allclose(np.asarray(out), np.asarray(ref), rtol=2e-2, atol=2e-2)

    print("KERNEL_OK")
</pallas_src>

<mosaic_0001>
module attributes {stable_mosaic.version = 11 : i64} {
  func.func @_conv_stats_kernel(%arg0: i32, %arg1: i32, %arg2: memref<1x216x256xbf16, #tpu.memory_space<vmem>>, %arg3: memref<32x216xbf16, #tpu.memory_space<vmem>>, %arg4: memref<32x1xf32, #tpu.memory_space<vmem>>, %arg5: memref<1x32x256xf32, #tpu.memory_space<vmem>>, %arg6: memref<1x32x2xf32, #tpu.memory_space<vmem>>) attributes {dimension_semantics = [#tpu.dimension_semantics<parallel>, #tpu.dimension_semantics<arbitrary>], iteration_bounds = array<i64: 2, 2>, scalar_prefetch = 0 : i64, scratch_operands = 0 : i64, tpu.core_type = #tpu.core_type<tc>, window_params = [{transform_indices = @transform_0, window_bounds = array<i64: 1, 216, 256>}, {pipeline_mode = #tpu.pipeline_mode<synchronous>, transform_indices = @transform_1, window_bounds = array<i64: 32, 216>}, {pipeline_mode = #tpu.pipeline_mode<synchronous>, transform_indices = @transform_2, window_bounds = array<i64: 32, 1>}, {transform_indices = @transform_3, window_bounds = array<i64: 1, 32, 256>}, {transform_indices = @transform_4, window_bounds = array<i64: 1, 32, 2>}]} {
    %c0 = arith.constant 0 : index
    %c0_0 = arith.constant 0 : index
    %0 = vector.load %arg3[%c0, %c0_0] : memref<32x216xbf16, #tpu.memory_space<vmem>>, vector<32x216xbf16>
    %c0_1 = arith.constant 0 : index
    %c0_2 = arith.constant 0 : index
    %c0_3 = arith.constant 0 : index
    %1 = vector.load %arg2[%c0_1, %c0_2, %c0_3] : memref<1x216x256xbf16, #tpu.memory_space<vmem>>, vector<1x216x256xbf16>
    %2 = vector.shape_cast %1 : vector<1x216x256xbf16> to vector<216x256xbf16>
    %cst = arith.constant dense<0.000000e+00> : vector<32x256xf32>
    %3 = tpu.matmul %0, %2, %cst {dimension_numbers = #tpu.dot_dimension_numbers<[1], [0], [0], [1], [0, 0, 1, 1], [], []>} : vector<32x216xbf16>, vector<216x256xbf16>, vector<32x256xf32> -> vector<32x256xf32>
    %c0_4 = arith.constant 0 : index
    %c0_5 = arith.constant 0 : index
    %4 = vector.load %arg4[%c0_4, %c0_5] : memref<32x1xf32, #tpu.memory_space<vmem>>, vector<32x1xf32>
    %5 = vector.broadcast %4 : vector<32x1xf32> to vector<32x256xf32>
    %6 = arith.addf %3, %5 : vector<32x256xf32>
    %c0_6 = arith.constant 0 : index
    %c0_7 = arith.constant 0 : index
    %c0_8 = arith.constant 0 : index
    %7 = vector.load %arg5[%c0_6, %c0_7, %c0_8] : memref<1x32x256xf32, #tpu.memory_space<vmem>>, vector<1x32x256xf32>
    %8 = vector.shape_cast %7 : vector<1x32x256xf32> to vector<32x256xf32>
    %9 = vector.shape_cast %6 : vector<32x256xf32> to vector<1x32x256xf32>
    tpu.vector_store %arg5[%c0_6, %c0_7, %c0_8], %9 {strides = array<i32>} : memref<1x32x256xf32, #tpu.memory_space<vmem>>, vector<1x32x256xf32>,
    %cst_9 = arith.constant dense<0.000000e+00> : vector<32xf32>
    %10 = vector.multi_reduction <add>, %6, %cst_9 [1] : vector<32x256xf32> to vector<32xf32>
    %11 = vector.shape_cast %10 : vector<32xf32> to vector<32x1xf32>
    %12 = arith.mulf %6, %6 : vector<32x256xf32>
    %cst_10 = arith.constant dense<0.000000e+00> : vector<32xf32>
    %13 = vector.multi_reduction <add>, %12, %cst_10 [1] : vector<32x256xf32> to vector<32xf32>
    %14 = vector.shape_cast %13 : vector<32xf32> to vector<32x1xf32>
    %15 = tpu.concatenate %11, %14 in 1 : vector<32x1xf32>, vector<32x1xf32> -> vector<32x2xf32>
    %c0_i32 = arith.constant 0 : i32
    %16 = arith.cmpi eq, %arg1, %c0_i32 : i32
    %17 = arith.extui %16 : i1 to i32
    %c0_i32_11 = arith.constant 0 : i32
    %18 = arith.cmpi ne, %17, %c0_i32_11 : i32
    scf.if %18 {
      %cst_18 = arith.constant 0.000000e+00 : f32
      %23 = vector.broadcast %cst_18 : f32 to vector<1x32x2xf32>
      %c0_19 = arith.constant 0 : index
      %c0_20 = arith.constant 0 : index
      %c0_21 = arith.constant 0 : index
      %24 = vector.load %arg6[%c0_19, %c0_20, %c0_21] : memref<1x32x2xf32, #tpu.memory_space<vmem>>, vector<1x32x2xf32>
      tpu.vector_store %arg6[%c0_19, %c0_20, %c0_21], %23 {strides = array<i32>} : memref<1x32x2xf32, #tpu.memory_space<vmem>>, vector<1x32x2xf32>,
    } else {
    }
    %c0_12 = arith.constant 0 : index
    %c0_13 = arith.constant 0 : index
    %c0_14 = arith.constant 0 : index
    %19 = vector.load %arg6[%c0_12, %c0_13, %c0_14] : memref<1x32x2xf32, #tpu.memory_space<vmem>>, vector<1x32x2xf32>
    %20 = vector.shape_cast %15 : vector<32x2xf32> to vector<1x32x2xf32>
    %21 = arith.addf %19, %20 : vector<1x32x2xf32>
    %c0_15 = arith.constant 0 : index
    %c0_16 = arith.constant 0 : index
    %c0_17 = arith.constant 0 : index
    %22 = vector.load %arg6[%c0_15, %c0_16, %c0_17] : memref<1x32x2xf32, #tpu.memory_space<vmem>>, vector<1x32x2xf32>
    tpu.vector_store %arg6[%c0_15, %c0_16, %c0_17], %21 {strides = array<i32>} : memref<1x32x2xf32, #tpu.memory_space<vmem>>, vector<1x32x2xf32>,
    return
  }
  func.func @transform_0(%arg0: i32, %arg1: i32) -> (i32, i32, i32) {
    %c0_i32 = arith.constant 0 : i32
    %c0_i32_0 = arith.constant 0 : i32
    return %arg0, %c0_i32, %arg1 : i32, i32, i32
  }
  func.func @transform_1(%arg0: i32, %arg1: i32) -> (i32, i32) {
    %c0_i32 = arith.constant 0 : i32
    %c0_i32_0 = arith.constant 0 : i32
    %c0_i32_1 = arith.constant 0 : i32
    return %c0_i32, %c0_i32_0 : i32, i32
  }
  func.func @transform_2(%arg0: i32, %arg1: i32) -> (i32, i32) {
    %c0_i32 = arith.constant 0 : i32
    %c0_i32_0 = arith.constant 0 : i32
    %c0_i32_1 = arith.constant 0 : i32
    return %c0_i32, %c0_i32_0 : i32, i32
  }
  func.func @transform_3(%arg0: i32, %arg1: i32) -> (i32, i32, i32) {
    %c0_i32 = arith.constant 0 : i32
    %c0_i32_0 = arith.constant 0 : i32
    return %arg0, %c0_i32, %arg1 : i32, i32, i32
  }
  func.func @transform_4(%arg0: i32, %arg1: i32) -> (i32, i32, i32) {
    %c0_i32 = arith.constant 0 : i32
    %c0_i32_0 = arith.constant 0 : i32
    %c0_i32_1 = arith.constant 0 : i32
    return %arg0, %c0_i32, %c0_i32_0 : i32, i32, i32
  }
}

</mosaic_0001>

<bundles_post_ra>
// kernel: tpu_custom_call.1
= control target key start
LH: loop header
LB: loop body
LE: loop exit
PB: predicated region body
PF: predicated region fallthrough
CT: control target
= control target key end

     0   :  { %10 = vsyncpa [#allocation3], 0  ;;  %s1401_s0 = inlined_call_operand.hbm [shape: bf16[2,216,512], index: 0, kind: input, shape index: {}]   ;;  %s1402_s1 = inlined_call_operand.vmem [shape: bf16[32,216], index: 1, kind: input, shape index: {}]   ;;  %s1403_s2 = inlined_call_operand.vmem [shape: f32[32,1], index: 2, kind: input, shape index: {}]   ;;  %s1404_s3 = inlined_call_operand.hbm [shape: f32[2,32,512], index: 3, kind: output, shape index: {0}]   ;;  %s1405_s4 = inlined_call_operand.vmem [shape: f32[2,32,2], index: 4, kind: output, shape index: {1}]  }
   0x1   :  { %12 = vsyncpa [#allocation3 + $0x1], 0 }
   0x2   :  { %13 = vsyncpa [#allocation4], 0 }
   0x3   :  { %15 = vsyncpa [#allocation4 + $0x1], 0  ;;  %s1115_s15 = smov 0   ;;  %s1117_s16 = smov 0  }
   0x4   :  { %s1119_s17 = smov 0   ;;  %s1121_s18 = smov 0  }
   0x5   :  { %s1123_s19 = smov 0   ;;  %s1125_s20 = smov 0  }
   0x6   :  { %s1127_s21 = smov 0   ;;  %s1129_s22 = smov 0  }
   0x7 LB: > { %s731_s23 = sadd.s32 4294967295, %s1078_s22   ;;  %s732_s24 = sadd.s32 4294967294, %s1078_s22   ;;  %s1078_s22 = sphi %s1129_s22, %s21_s22   ;;  %s1074_s21 = sphi %s1127_s21, %s1427_s21   ;;  %s1070_s20 = sphi %s1125_s20, %s1426_s20   ;;  %s1066_s19 = sphi %s1123_s19, %s1425_s19   ;;  %s1062_s18 = sphi %s1121_s18, %s1424_s18   ;;  %s1058_s17 = sphi %s1119_s17, %s1423_s17   ;;  %s1054_s16 = sphi %s1117_s16, %s1422_s16   ;;  %s1050_s15 = sphi %s1115_s15, %s1421_s15  }
   0x8   : > { %s30_s25 = sadd.s32 1, %s1070_s20  ;;  %s33_s26 = sadd.s32 1, %s1074_s21 }
   0x9   : > { %p31_p0 = scmp.ge.s32.totalorder %s30_s25, 2  ;;  %s42_s27 = sadd.s32 1, %s1058_s17 }
   0xa   : > { %p49_p1 = scmp.ne.s32.totalorder %s1058_s17, %s1054_s16  ;;  %p50_p2 = scmp.eq.s32.totalorder %s1078_s22, 0 }
   0xb   : > { %s1429_s25 = smov (%p31_p0, %s30_s25), 0  ;;  %s1431_s26 = smov (!%p31_p0, %s33_s26), %s1074_s21 }
   0xc   : > { %1409 = sst [smem:[#allocation8_spill]] %s1429_s25  ;;  %s38_s28 = ssub.s32 %s1070_s20, %s1429_s25 }
   0xd   : > { %p1168_p3 = por %p50_p2, %p49_p1  ;;  %p35_p4 = scmp.ge.s32.totalorder %s1431_s26, 2 }
   0xe   : > { %p55_p5 = scmp.ne.s32.totalorder %s1054_s16, %s1050_s15  ;;  %p56_p6 = scmp.eq.s32.totalorder %s731_s23, 0 }
   0xf   : > { %p123_p7 = scmp.eq.s32.totalorder %s731_s23, 3  ;;  %s1433_s26 = smov (%p35_p4, %s1431_s26), 0 }
  0x10   : > { %1411 = sst [smem:[#allocation9_spill]] %s1433_s26  ;;  %p1176_p8 = por %p56_p6, %p55_p5 }
  0x11   : > { %p1180_p9 = por %p123_p7, %p49_p1  ;;  %s37_s6 = ssub.s32 %s1074_s21, %s1433_s26 }
  0x12   : > { %p129_p10 = scmp.eq.s32.totalorder %s732_s24, 3  ;;  %s39_s7 = sor.u32 %s38_s28, %s37_s6 }
  0x13   : > { %s1413_s5 = scalar_select %p1180_p9, 1, 0 }
  0x14   : > { %p40_p11 = scmp.eq.s32.totalorder %s39_s7, 0  ;;  %p1186_p12 = por %p129_p10, %p55_p5 }
  0x15   : > { %p827_p13 = scmp.lt.s32.totalorder %s1078_s22, 4  ;;  %s181_s9 = sand.u32 1, %s1058_s17  }
  0x16   : > { %s1414_s8 = scalar_select %p1186_p12, 1, 0 }
  0x17   : > { %s1193_s10 = scalar_select %p40_p11, %s1058_s17, %s42_s27  }
  0x18   : > { %s812_s11 = smul.u32 216, %s181_s9  ;;  %s735_s12 = sshll.u32 %s1070_s20, 1 }
  0x19   : > { %s813_s13 = smul.u32 108, %s1074_s21  ;;  %p1199_p0 = pnand %p827_p13, %p1168_p3 }
  0x1a   : > { %s185_s24 = scalar_lea.vmem [#allocation2], %s812_s11  ;;  %s1211_s29 = scalar_lea.sflag [#allocation3], %s181_s9 }
  0x1b   : > { %s191_s23 = sadd.s32 %s813_s13, %s735_s12  ;;  %s194_s28 = sshll.u32 %s185_s24, 4  ;;  %s1203_s28 = int_to_ptr.vmem [resolvable:$true] %s194_s28 }
  0x1c   : > { %s736_s6 = sshll.u32 %s191_s23, 6  ;;  %p952_p3 = pneg %p1199_p0 }
  0x1d   : > { %s1208_s27 = scalar_lea.hbm %s1401_s0, %s736_s6  ;;  %s955_s26 = scalar_lea.hbm %s1401_s0, 13824 }
  0x1e   : > { %s950_s25 = scalar_lea.hbm %s1208_s27, 3456  ;;  %p956_p6 = scmp.lt.u32.totalorder %s1208_s27, %s1401_s0 }
  0x1f   : > { %p951_p2 = scmp.ne.s32.totalorder %s1208_s27, %s950_s25  ;;  %p957_p7 = scmp.lt.u32.totalorder %s955_s26, %s950_s25 }
  0x20   : > { %p959_p11 = scmp.lt.u32.totalorder %s950_s25, %s1208_s27 }
  0x21   : > { %p953_p4 = pnand %p952_p3, %p951_p2  ;;  %p958_p10 = por %p957_p7, %p956_p6 }
  0x23   : > { %p954_p5 = pneg %p953_p4  ;;  %p960_p13 = por %p959_p11, %p958_p10 }
  0x25   : > { %p961_p1 = pnand %p960_p13, %p954_p5 }
  0x27   : > { %964 = shalt.err (!%p961_p1)
}
  0x28   : > { %s965_s9 = scalar_lea.vmem %s1203_s28, 3456  ;;  %s1080_s24 = smov [#allocation2]  }
  0x29   : > { %p966_p2 = scmp.ne.s32.totalorder %s1203_s28, %s965_s9  ;;  %s970_s6 = sshll.u32 %s1080_s24, 4  ;;  %s971_s6 = int_to_ptr.vmem [resolvable:$false] %s970_s6 }
  0x2a   : > { %s972_s7 = scalar_lea.vmem %s971_s6, 6912  ;;  %p973_p9 = scmp.lt.s32.totalorder %s1203_s28, %s971_s6 }
  0x2b   : > { %p968_p4 = pnand %p966_p2, %p952_p3  ;;  %p974_p6 = scmp.lt.s32.totalorder %s972_s7, %s965_s9 }
  0x2d   : > { %p969_p12 = pneg %p968_p4  ;;  %p975_p7 = por %p974_p6, %p973_p9 }
  0x2f   : > { %p976_p10 = pnand %p975_p7, %p969_p12 }
  0x31   : > { %979 = shalt.err (!%p976_p10)
}
  0x32   : > { %s1081_s25 = smov 256   ;;  %s1082_s11 = smov 128  }
  0x33   : > { %s1083_s12 = smov 8   ;;  %p202_p1 = scmp.lt.s32.totalorder %s1078_s22, 5 }
  0x34   : > { %822 = dma.hbm_to_vmem [thread:$0]  (!%p1199_p0), %s1208_s27, 3456, %s1203_s28, %s1211_s29, %s1081_s25, %s1082_s11, %s1083_s12  }
  0x35   : > { %p1416_p3 = scmp.ge.s32.totalorder %s1078_s22, 1 }
  0x37   : > { %p203_p5 = pnand %p1416_p3, %p202_p1 }
  0x38   : > { %s1243_s26 = sand.u32 (!%p203_p5), 1, %s1054_s16  }
  0x39   : > { %206 = sbr.rel (%p203_p5) target bundleno = 529 (0x211), region = 32  ;;  %s209_s23 = scalar_lea.sflag (!%p203_p5), [#allocation3], %s1243_s26 }
  0x3a   : > { %s814_s13 = smul.u32 (!%p203_p5), 216, %s1243_s26 }
  0x3c   : > { %s1247_s9 = scalar_lea.vmem (!%p203_p5), [#allocation2], %s814_s13 }
  0x40   : > { %1041 = dma.done.wait (%p1176_p8), %s209_s23, 3456  }
  0x41   : > { %1043 = vsyncadd (%p1176_p8), %s209_s23, 4294963840  ;;  %p244_p9 = scmp.lt.s32.totalorder %s1066_s19, 1  ;;  %v1084_v0 = vmov 0   ;;  %v903_v1 = vld [vmem:[%s1247_s9 + $0x4] ss:$8 sps:$4 sm:$0xff]   ;;  %vm458_vm0 = vcmask 719872  }
  0x42   : > { %901 = vset.pattern.permute.xlu0 %v1084_v0  ;;  %902 = vset.pattern.permute.xlu1 %v1084_v0  ;;  %v905_v2 = vld [vmem:[%s1247_s9] ss:$8 sps:$4 sm:$0xff]   ;;  %v906_v3 = vld [vmem:[%s1247_s9 + $0x14] ss:$8 sps:$4 sm:$0xff]   ;;  %v908_v4 = vld [vmem:[%s1247_s9 + $0x10] ss:$8 sps:$4 sm:$0xff]  }
  0x43   : > { %s245_s14 = scalar_select %p244_p9, %s1066_s19, 1  ;;  %472 = vmatprep.subr.bf16.mxu0 %v903_v1  ;;  %784 = vmatprep.subr.bf16.mxu1 %v903_v1  ;;  %v909_v5 = vld [vmem:[%s1247_s9 + $0x24] ss:$8 sps:$4 sm:$0xff]   ;;  %v911_v6 = vld [vmem:[%s1247_s9 + $0x20] ss:$8 sps:$4 sm:$0xff]   ;;  %v283_v17 = vld [vmem:[%s1403_s2 + $0x10] sm:$0xff] }
  0x44   : > { %473 = vmatpush1.bf16.msra.mxu0 %v905_v2  ;;  %798 = vmatpush1.bf16.msra.mxu1 %v905_v2  ;;  %v912_v7 = vld [vmem:[%s1247_s9 + $0x34] ss:$8 sps:$4 sm:$0xff]   ;;  %v914_v8 = vld [vmem:[%s1247_s9 + $0x30] ss:$8 sps:$4 sm:$0xff]   ;;  %v915_v9 = vld [vmem:[%s1247_s9 + $0x44] ss:$8 sps:$4 sm:$0xff]  }
  0x45   : > { %s783_s28 = sshll.u32 %s245_s14, 5  ;;  %474 = vmatprep.subr.bf16.mxu0 %v906_v3  ;;  %785 = vmatprep.subr.bf16.mxu1 %v906_v3  ;;  %v917_v10 = vld [vmem:[%s1247_s9 + $0x40] ss:$8 sps:$4 sm:$0xff]   ;;  %v918_v11 = vld [vmem:[%s1247_s9 + $0x54] ss:$8 sps:$4 sm:$0xff]   ;;  %vm465_vm1 = vcmask 1043456  }
  0x46   : > { %s1258_s24 = scalar_lea.vmem %s1405_s4, %s783_s28  ;;  %v920_v12 = vld [vmem:[%s1247_s9 + $0x50] ss:$8 sps:$4 sm:$0xff]   ;;  %v946_v13 = vld [vmem:[%s1402_s1 + $0x4] ss:$8 sps:$4 sm:$0xff]   ;;  %v949_v15 = vld [vmem:[%s1402_s1 + $0x14] ss:$8 sps:$4 sm:$0xff]   ;;  %297 = vperm.xlu1 %902, %v283_v17  }
  0x47   : > { %v921_v14 = vld [vmem:[%s1247_s9 + $0x64] ss:$8 sps:$4 sm:$0xff]   ;;  %774 = vmatprep.mubr.msk.bf16.mxu0 %vm458_vm0, %v946_v13  ;;  %775 = vmatprep.mubr.msk.bf16.mxu1 %vm458_vm0, %v949_v15  ;;  %v923_v19 = vld [vmem:[%s1247_s9 + $0x60] ss:$8 sps:$4 sm:$0xff]   ;;  %v924_v21 = vld [vmem:[%s1247_s9 + $0x74] ss:$8 sps:$4 sm:$0xff]  }
  0x48   : > { %475 = vmatpush1.bf16.msra.mxu0 %v908_v4  ;;  %799 = vmatpush1.bf16.msra.mxu1 %v908_v4  ;;  %v281_v16 = vld [vmem:[%s1403_s2] sm:$0xff]  ;;  %v282_v18 = vld [vmem:[%s1403_s2 + $0x8] sm:$0xff]  ;;  %v284_v20 = vld [vmem:[%s1403_s2 + $0x18] sm:$0xff]  ;;  %vm565_vm2 = vcmask 7168   ;;  %p776_p8 = scmp.ne.s32.totalorder %s1062_s18, 0 }
  0x49   : > { %476 = vmatprep.subr.bf16.mxu0 %v909_v5  ;;  %786 = vmatprep.subr.bf16.mxu1 %v909_v5  ;;  %v926_v22 = vld [vmem:[%s1247_s9 + $0x70] ss:$8 sps:$4 sm:$0xff]   ;;  %v927_v23 = vld [vmem:[%s1247_s9 + $0x84] ss:$8 sps:$4 sm:$0xff]   ;;  %v929_v24 = vld [vmem:[%s1247_s9 + $0x80] ss:$8 sps:$4 sm:$0xff]  }
  0x4a   : > { %287 = vperm.xlu0 %901, %v281_v16   ;;  %302 = vperm.xlu1 %902, %v284_v20   ;;  %v930_v25 = vld [vmem:[%s1247_s9 + $0x94] ss:$8 sps:$4 sm:$0xff]   ;;  %v932_v26 = vld [vmem:[%s1247_s9 + $0x90] ss:$8 sps:$4 sm:$0xff]   ;;  %v933_v27 = vld [vmem:[%s1247_s9 + $0xa4] ss:$8 sps:$4 sm:$0xff]  }
  0x4b   : > { %v935_v28 = vld [vmem:[%s1247_s9 + $0xa0] ss:$8 sps:$4 sm:$0xff]   ;;  %v936_v29 = vld [vmem:[%s1247_s9 + $0xb4] ss:$8 sps:$4 sm:$0xff]   ;;  %v938_v30 = vld [vmem:[%s1247_s9 + $0xb0] ss:$8 sps:$4 sm:$0xff]  }
  0x4c   : > { %477 = vmatpush1.bf16.msra.mxu0 %v911_v6  ;;  %800 = vmatpush1.bf16.msra.mxu1 %v911_v6  ;;  %v939_v31 = vld [vmem:[%s1247_s9 + $0xc4] ss:$8 sps:$4 sm:$0xff]   ;;  %v280_v32 = vld [vmem:[%s1247_s9 + $0xd0] sm:$0xff]  ;;  %v941_v33 = vld [vmem:[%s1247_s9 + $0xc0] ss:$8 sps:$4 sm:$0xff]   ;;  %s738_s9 = sshll.u32 %s1243_s26, 6 }
  0x4d   : > { %478 = vmatprep.subr.bf16.mxu0 %v912_v7  ;;  %787 = vmatprep.subr.bf16.mxu1 %v912_v7  ;;  %v772_v34 = vcombine.high %v280_v32, %v280_v32  ;;  %v771_v35 = vcombine.low %v280_v32, %v280_v32  ;;  %v944_v37 = vld [vmem:[%s1402_s1] ss:$8 sps:$4 sm:$0xff]   ;;  %v947_v38 = vld [vmem:[%s1402_s1 + $0x10] ss:$8 sps:$4 sm:$0xff]   ;;  %s1312_s11 = scalar_lea.vmem [#allocation5], %s738_s9  ;;  %vm574_vm3 = vcmask (!%p776_p8), 15360  }
  0x4e   : > { %292 = vperm.xlu0 %901, %v282_v18  }
  0x4f   : > { %v467_v36 = vsel %vm465_vm1, %v771_v35, 0 }
  0x50   : > { %479 = vmatpush1.bf16.msra.mxu0 %v914_v8  ;;  %801 = vmatpush1.bf16.msra.mxu1 %v914_v8 }
  0x51   : > { %480 = vmatprep.subr.bf16.mxu0 %v915_v9  ;;  %788 = vmatprep.subr.bf16.mxu1 %v915_v9 }
  0x54   : > { %481 = vmatpush1.bf16.msra.mxu0 %v917_v10  ;;  %802 = vmatpush1.bf16.msra.mxu1 %v917_v10 }
  0x55   : > { %482 = vmatprep.subr.bf16.mxu0 %v918_v11  ;;  %789 = vmatprep.subr.bf16.mxu1 %v918_v11 }
  0x58   : > { %483 = vmatpush1.bf16.msra.mxu0 %v920_v12  ;;  %803 = vmatpush1.bf16.msra.mxu1 %v920_v12 }
  0x59   : > { %484 = vmatprep.subr.bf16.mxu0 %v921_v14  ;;  %790 = vmatprep.subr.bf16.mxu1 %v921_v14 }
  0x5c   : > { %485 = vmatpush1.bf16.msra.mxu0 %v923_v19  ;;  %804 = vmatpush1.bf16.msra.mxu1 %v923_v19 }
  0x5d   : > { %486 = vmatprep.subr.bf16.mxu0 %v924_v21  ;;  %791 = vmatprep.subr.bf16.mxu1 %v924_v21 }
  0x60   : > { %487 = vmatpush1.bf16.msra.mxu0 %v926_v22  ;;  %805 = vmatpush1.bf16.msra.mxu1 %v926_v22 }
  0x61   : > { %488 = vmatprep.subr.bf16.mxu0 %v927_v23  ;;  %792 = vmatprep.subr.bf16.mxu1 %v927_v23  ;;  %v1085_v23 = vmov (!%p776_p8), 0.0  }
  0x62   : > { %575 = vst.msk [vmem:[%s1258_s24] sm:$0xff] (!%p776_p8), %vm574_vm3, %v1085_v23  ;;  %576 = vst.msk [vmem:[%s1258_s24 + $0x8] sm:$0xff] (!%p776_p8), %vm574_vm3, %v1085_v23 }
  0x63   : > { %577 = vst.msk [vmem:[%s1258_s24 + $0x10] sm:$0xff] (!%p776_p8), %vm574_vm3, %v1085_v23  ;;  %578 = vst.msk [vmem:[%s1258_s24 + $0x18] sm:$0xff] (!%p776_p8), %vm574_vm3, %v1085_v23 }
  0x64   : > { %489 = vmatpush1.bf16.msra.mxu0 %v929_v24  ;;  %806 = vmatpush1.bf16.msra.mxu1 %v929_v24 }
  0x65   : > { %490 = vmatprep.subr.bf16.mxu0 %v930_v25  ;;  %793 = vmatprep.subr.bf16.mxu1 %v930_v25 }
  0x68   : > { %491 = vmatpush1.bf16.msra.mxu0 %v932_v26  ;;  %807 = vmatpush1.bf16.msra.mxu1 %v932_v26 }
  0x69   : > { %492 = vmatprep.subr.bf16.mxu0 %v933_v27  ;;  %794 = vmatprep.subr.bf16.mxu1 %v933_v27 }
  0x6c   : > { %493 = vmatpush1.bf16.msra.mxu0 %v935_v28  ;;  %808 = vmatpush1.bf16.msra.mxu1 %v935_v28 }
  0x6d   : > { %494 = vmatprep.subr.bf16.mxu0 %v936_v29  ;;  %795 = vmatprep.subr.bf16.mxu1 %v936_v29 }
  0x70   : > { %495 = vmatpush1.bf16.msra.mxu0 %v938_v30  ;;  %809 = vmatpush1.bf16.msra.mxu1 %v938_v30 }
  0x71   : > { %496 = vmatprep.subr.bf16.mxu0 %v939_v31  ;;  %796 = vmatprep.subr.bf16.mxu1 %v939_v31 }
  0x74   : > { %497 = vmatpush1.bf16.msra.mxu0 %v941_v33  ;;  %810 = vmatpush1.bf16.msra.mxu1 %v941_v33 }
  0x75   : > { %773 = vmatprep.subr.msk.bf16.mxu0 %vm465_vm1, %v772_v34  ;;  %797 = vmatprep.subr.msk.bf16.mxu1 %vm465_vm1, %v772_v34 }
  0x78   : > { %499 = vmatpush1.bf16.msra.mxu0 %v467_v36  ;;  %811 = vmatpush1.bf16.msra.mxu1 %v467_v36 }
  0x7b   : > { %505 = vmatmul.mubr.bf16.vlgmr.msra.gmra.mrb[0].mxu0 %v944_v37  ;;  %515 = vmatmul.mubr.bf16.vlgmr.msra.gmra.mrb[0].mxu1 %v947_v38 }
  0xc5   : > { %v298_v40 = vpop.permute.xlu1 %297 }
  0xc9   : > { %v288_v39 = vpop.permute.xlu0 %287  ;;  %v303_v42 = vpop.permute.xlu1 %302 }
  0xcd   : > { %v293_v41 = vpop.permute.xlu0 %292 }
 0x14e   : > { %v506_v43 = vpop.f32.mrb[0].mxu0  ;;  %v516_v44 = vpop.f32.mrb[0].mxu1 }
 0x14f   : > { %v507_v45 = vadd.f32 %v506_v43, %v288_v39  ;;  %v508_v46 = vpop.f32.mrb[1].mxu0  ;;  %v517_v47 = vadd.f32 %v516_v44, %v298_v40  ;;  %v518_v48 = vpop.f32.mrb[1].mxu1 }
 0x150   : > { %v509_v49 = vadd.f32 %v508_v46, %v288_v39  ;;  %v510_v50 = vpop.f32.mrb[2].mxu0  ;;  %v519_v51 = vadd.f32 %v518_v48, %v298_v40  ;;  %v520_v52 = vpop.f32.mrb[2].mxu1 }
 0x151   : > { %525 = vst [vmem:[%s1312_s11] sm:$0xff] %v507_v45  ;;  %529 = vst [vmem:[%s1312_s11 + $0x20] sm:$0xff] %v517_v47  ;;  %v511_v53 = vadd.f32 %v510_v50, %v293_v41  ;;  %v512_v54 = vpop.f32.mrb[3].mxu0  ;;  %v521_v55 = vadd.f32 %v520_v52, %v303_v42  ;;  %v522_v56 = vpop.f32.mrb[3].mxu1  ;;  %v545_v57 = vmul.f32 %v507_v45, %v507_v45 }
 0x152   : > { %v549_v58 = vmul.f32 %v517_v47, %v517_v47  ;;  %526 = vst [vmem:[%s1312_s11 + $0x8] sm:$0xff] %v509_v49  ;;  %530 = vst [vmem:[%s1312_s11 + $0x28] sm:$0xff] %v519_v51  ;;  %v513_v59 = vadd.f32 %v512_v54, %v293_v41  ;;  %v523_v60 = vadd.f32 %v522_v56, %v303_v42 }
 0x153   : > { %v533_v61 = vadd.f32 %v509_v49, %v507_v45  ;;  %v539_v62 = vadd.f32 %v519_v51, %v517_v47  ;;  %527 = vst [vmem:[%s1312_s11 + $0x10] sm:$0xff] %v511_v53  ;;  %531 = vst [vmem:[%s1312_s11 + $0x30] sm:$0xff] %v521_v55  ;;  %v546_v63 = vmul.f32 %v509_v49, %v509_v49 }
 0x154   : > { %v550_v0 = vmul.f32 %v519_v51, %v519_v51  ;;  %v547_v1 = vmul.f32 %v511_v53, %v511_v53  ;;  %v551_v2 = vmul.f32 %v521_v55, %v521_v55  ;;  %528 = vst [vmem:[%s1312_s11 + $0x18] sm:$0xff] %v513_v59  ;;  %532 = vst [vmem:[%s1312_s11 + $0x38] sm:$0xff] %v523_v60 }
 0x155   : > { %534 = vadd.xlane.f32.xlu0 %v533_v61  ;;  %v536_v3 = vadd.f32 %v513_v59, %v511_v53  ;;  %v542_v4 = vadd.f32 %v523_v60, %v521_v55  ;;  %v548_v5 = vmul.f32 %v513_v59, %v513_v59  ;;  %v552_v6 = vmul.f32 %v523_v60, %v523_v60 }
 0x156   : > { %v553_v7 = vadd.f32 %v546_v63, %v545_v57  ;;  %v559_v8 = vadd.f32 %v550_v0, %v549_v58 }
 0x157   : > { %537 = vadd.xlane.f32.xlu1 %v536_v3  ;;  %v556_v9 = vadd.f32 %v548_v5, %v547_v1  ;;  %v562_v10 = vadd.f32 %v552_v6, %v551_v2 }
 0x159   : > { %540 = vadd.xlane.f32.xlu0 %v539_v62 }
 0x15b   : > { %554 = vadd.xlane.f32.xlu1 %v553_v7 }
 0x15d   : > { %543 = vadd.xlane.f32.xlu0 %v542_v4 }
 0x15f   : > { %560 = vadd.xlane.f32.xlu1 %v559_v8 }
 0x161   : > { %557 = vadd.xlane.f32.xlu0 %v556_v9 }
 0x165   : > { %563 = vadd.xlane.f32.xlu0 %v562_v10 }
 0x1e2   : > { %v535_v11 = vpop.xlane.xlu0 %534 }
 0x1e4   : > { %v538_v12 = vpop.xlane.xlu1 %537 }
 0x1e6   : > { %v541_v13 = vpop.xlane.xlu0 %540 }
 0x1e8   : > { %v555_v14 = vpop.xlane.xlu1 %554 }
 0x1e9   : > { %v566_v15 = vsel %vm565_vm2, %v535_v11, %v555_v14 }
 0x1ea   : > { %v544_v16 = vpop.xlane.xlu0 %543 }
 0x1ec   : > { %v561_v17 = vpop.xlane.xlu1 %560 }
 0x1ed   : > { %v568_v18 = vsel %vm565_vm2, %v541_v13, %v561_v17  ;;  %573 = sbr.rel (%p776_p8) target bundleno = 500 (0x1f4), region = 40 }
 0x1ee   : > { %v558_v19 = vpop.xlane.xlu0 %557 }
 0x1ef   : > { %v567_v20 = vsel %vm565_vm2, %v538_v12, %v558_v19 }
 0x1f2   : > { %v564_v21 = vpop.xlane.xlu0 %563 }
 0x1f3   : > { %v569_v22 = vsel %vm565_vm2, %v544_v16, %v564_v21 }
 0x1f4 PF: > { %v579_v24 = vld [vmem:[%s1258_s24] sm:$0xff]  ;;  %vm587_vm4 = vcmask 15360   ;;  %v580_v25 = vld [vmem:[%s1258_s24 + $0x8] sm:$0xff]  ;;  %v581_v26 = vld [vmem:[%s1258_s24 + $0x10] sm:$0xff]  ;;  %s778_s12 = sshll.u32 %s1062_s18, 1  ;;  %s779_s13 = sshll.u32 %s1066_s19, 4 }
 0x1f5   : > { %v583_v27 = vadd.f32 %v579_v24, %v566_v15  ;;  %v584_v28 = vadd.f32 %v580_v25, %v567_v20  ;;  %v585_v29 = vadd.f32 %v581_v26, %v568_v18  ;;  %v582_v30 = vld [vmem:[%s1258_s24 + $0x18] sm:$0xff]  ;;  %s613_s23 = sshll.u32 %s1312_s11, 4  ;;  %s610_s14 = sadd.s32 %s779_s13, %s778_s12  ;;  %s1334_s23 = int_to_ptr.vmem [resolvable:$true] %s613_s23 }
 0x1f6   : > { %v586_v31 = vadd.f32 %v582_v30, %v569_v22  ;;  %s780_s18 = sshll.u32 %s610_s14, 7  ;;  %s593_s29 = scalar_lea.sflag [#allocation4], %s1243_s26 }
 0x1f7   : > { %588 = vst.msk [vmem:[%s1258_s24] sm:$0xff] %vm587_vm4, %v583_v27  ;;  %589 = vst.msk [vmem:[%s1258_s24 + $0x8] sm:$0xff] %vm587_vm4, %v584_v28  ;;  %s1347_s19 = scalar_lea.hbm %s1404_s3, %s780_s18  ;;  %s980_s30 = scalar_lea.vmem %s1334_s23, 1024 }
 0x1f8   : > { %590 = vst.msk [vmem:[%s1258_s24 + $0x10] sm:$0xff] %vm587_vm4, %v585_v29  ;;  %591 = vst.msk [vmem:[%s1258_s24 + $0x18] sm:$0xff] %vm587_vm4, %v586_v31  ;;  %p981_p12 = scmp.ne.s32.totalorder %s1334_s23, %s980_s30  ;;  %p1417_p0 = scmp.ne.s32.totalorder %s1413_s5, 0 }
 0x1f9   : > { %s1086_s6 = smov [#allocation5]  }
 0x1fa   : > { %p982_p11 = pnand %p981_p12, %p1417_p0  ;;  %s984_s7 = sshll.u32 %s1086_s6, 4  ;;  %s985_s7 = int_to_ptr.vmem [resolvable:$false] %s984_s7 }
 0x1fb   : > { %s986_s25 = scalar_lea.vmem %s985_s7, 2048  ;;  %p987_p2 = scmp.lt.s32.totalorder %s1334_s23, %s985_s7 }
 0x1fc   : > { %p983_p13 = pneg %p982_p11  ;;  %p988_p4 = scmp.lt.s32.totalorder %s986_s25, %s980_s30 }
 0x1fe   : > { %p989_p6 = por %p988_p4, %p987_p2 }
 0x200   : > { %p990_p7 = pnand %p989_p6, %p983_p13 }
 0x202   : > { %993 = shalt.err (!%p990_p7)
}
 0x203   : > { %s994_s24 = scalar_lea.hbm %s1347_s19, 1024  ;;  %s998_s12 = scalar_lea.hbm %s1404_s3, 4096 }
 0x204   : > { %p995_p10 = scmp.ne.s32.totalorder %s1347_s19, %s994_s24  ;;  %p999_p5 = scmp.lt.u32.totalorder %s1347_s19, %s1404_s3 }
 0x205   : > { %p1000_p9 = scmp.lt.u32.totalorder %s998_s12, %s994_s24  ;;  %p1002_p12 = scmp.lt.u32.totalorder %s994_s24, %s1347_s19 }
 0x206   : > { %p996_p1 = pnand %p995_p10, %p1417_p0 }
 0x207   : > { %p1001_p8 = por %p1000_p9, %p999_p5 }
 0x208   : > { %p997_p3 = pneg %p996_p1 }
 0x209   : > { %p1003_p11 = por %p1002_p12, %p1001_p8 }
 0x20b   : > { %p1004_p13 = pnand %p1003_p11, %p997_p3 }
 0x20d   : > { %1007 = shalt.err (!%p1004_p13)
}
 0x20e   : > { %s1087_s18 = smov 256   ;;  %s1088_s28 = smov 512  }
 0x20f   : > { %s1089_s27 = smov 16  }
 0x210   : > { %817 = dma.vmem_to_hbm [thread:$0]  (%p1417_p0), %s1334_s23, 1024, %s1347_s19, %s593_s29, %s1087_s18, %s1088_s28, %s1089_s27  }
 0x211 PF: > { %p828_p2 = scmp.ge.s32.totalorder %s1078_s22, 2  ;;  %s631_s30 = sand.u32 1, %s1050_s15  }
 0x212   : > { %p1418_p4 = scmp.ne.s32.totalorder %s1414_s8, 0  ;;  %s632_s6 = scalar_lea.sflag [#allocation4], %s631_s30 }
 0x214   : > { %p824_p6 = pnand %p828_p2, %p1418_p4 }
 0x216   : > { %1045 = dma.done.wait (!%p824_p6), %s632_s6, 1024  }
 0x217   : > { %1047 = vsyncadd (!%p824_p6), %s632_s6, 4294966272  ;;  %s21_s22 = sadd.s32 1, %s1078_s22   ;;  %s1419_s5 = sld [smem:[#allocation8_spill]] }
 0x218   : > { %p18_p7 = scmp.ge.s32.totalorder %s21_s22, 6   ;;  %s1420_s26 = sld [smem:[#allocation9_spill]] }
 0x219   : > { %s1421_s15 = smov %s1054_s16  ;;  %s1422_s16 = smov %s1058_s17 }
 0x21a   : > { %s1423_s17 = smov %s1193_s10  ;;  %s1424_s18 = smov %s1070_s20 }
 0x21b   : > { %s1425_s19 = smov %s1074_s21  ;;  %20 = sbr.rel (!%p18_p7) target bundleno = 7 (0x7), region = 93 }
 0x21d   : > { %s1426_s20 = smov %s1419_s5 }
 0x21e   : > { %s1427_s21 = smov %s1420_s26 }
 0x222   :  { %645 = vsyncpa [#allocation3], 1 }
 0x223   :  { %647 = vsyncpa [#allocation3 + $0x1], 1 }
 0x224   :  { %648 = vsyncpa [#allocation4], 1 }
 0x225   :  { %650 = vsyncpa [#allocation4 + $0x1], 1 }

</bundles_post_ra>
